<compile_context>
chip_gen: v6e
topology: v6e:2x2x1
jax: 0.10.0
libtpu: 0.0.40
codegen_flags: <defaults>
</compile_context>

<pallas_src>
import functools

import jax
import jax.numpy as jnp
from jax import lax
from jax.experimental import pallas as pl
from jax.experimental.pallas import tpu as pltpu


def _dice_partial_kernel(p_ref, t_ref, num_out, den_out, num_acc, den_acc, *,
                         d_r, tile, j_per_slice, total_blocks, ragged):
    pi = pl.program_id(0)                 # parallel feature-range slice
    ji = pl.program_id(2)                 # feature block within the slice
    j_last = pl.num_programs(2) - 1

    @pl.when(ji == 0)
    def _init():
        num_acc[...] = jnp.zeros_like(num_acc)
        den_acc[...] = jnp.zeros_like(den_acc)

    def _accumulate(p, t):
        # sum(p) + sum(t) == sum(p + t): one fewer lane-reduce per step.
        num_acc[...] += jnp.sum(p * t, axis=1, keepdims=True)
        den_acc[...] += jnp.sum(p + t, axis=1, keepdims=True)

    if ragged:
        # Only the globally-last feature block extends past d_r; mask it.
        g = pi * j_per_slice + ji

        @pl.when(g != (total_blocks - 1))
        def _full():
            _accumulate(p_ref[...].astype(jnp.float32),
                        t_ref[...].astype(jnp.float32))

        @pl.when(g == (total_blocks - 1))
        def _masked():
            rem = d_r - (total_blocks - 1) * tile       # static, in (0, tile)
            lane = lax.broadcasted_iota(jnp.int32, p_ref.shape, 1)
            valid = lane < rem
            _accumulate(jnp.where(valid, p_ref[...].astype(jnp.float32), 0.0),
                        jnp.where(valid, t_ref[...].astype(jnp.float32), 0.0))
    else:
        _accumulate(p_ref[...].astype(jnp.float32),
                    t_ref[...].astype(jnp.float32))

    @pl.when(ji == j_last)
    def _finalize():
        num_out[...] = num_acc[...].reshape(num_out.shape)
        den_out[...] = den_acc[...].reshape(den_out.shape)


def _pick_subrow_split(n, d):
    """Pick k (>= 1, k | d) so n*k >= 8 when possible (sublane fill)."""
    if n >= 8 or d == 0:
        return 1
    want = -(-8 // n)                     # ceil(8 / n)
    # Prefer the smallest k >= want dividing d (keeps feature rows long).
    for cand in range(want, min(d, 8 * want) + 1):
        if d % cand == 0:
            return cand
    # Fall back to the largest divisor <= want (rows may stay < 8).
    # TODO(synk): when d has no small divisor (rows stay < 8) the kernel can
    # become VPU-bound on v6e/v7x; a prefix + masked-tail split would fix it.
    for cand in range(min(want, d), 0, -1):
        if d % cand == 0:
            return cand
    return 1


def _vmem_budget():
    """Generation-aware (vmem_limit_bytes, per-input block byte budget)."""
    mib = 1024 * 1024
    phys = None
    try:
        info = pltpu.get_tpu_info()
        phys = getattr(info, "vmem_capacity_bytes", None)
    except Exception:
        phys = None
    if not phys:
        phys = 64 * mib                   # conservative (v7x-sized) fallback
    # v5e/v6e (128 MiB physical) -> 96 MiB limit; v7x (64 MiB) -> 48 MiB.
    vmem_limit = max(32 * mib, min(int(phys) * 3 // 4, 96 * mib))
    # 2 inputs x 2 pipeline buffers per block; leave headroom for scratch,
    # outputs and compiler-internal allocations.
    block_budget = max(1 * mib, min(8 * mib, (vmem_limit - 4 * mib) // 4))
    return vmem_limit, block_budget


def binary_dice_loss(predict, target, *, smooth=1.0, reduction="mean"):
    """Pallas implementation of BinaryDiceLoss.forward.

    Like the reference forward, the result is always 1 - mean(dice); the
    module's `reduction` / `p` attributes are not used by its forward().
    """
    assert predict.shape[0] == target.shape[0], "batch size mismatch"
    del reduction                          # forward() always takes the mean

    n = predict.shape[0]
    p2 = predict.reshape(n, -1)
    t2 = target.reshape(n, -1)
    d = p2.shape[1]
    smooth = float(smooth)

    if d == 0:
        # Degenerate: all sums are 0 -> dice = 2*smooth/smooth = 2.
        return jnp.float32(1.0 - 2.0)

    # --- sublane fill: split each row into k consecutive sub-rows (a pure
    #     metadata reshape, no HBM traffic) so n*k >= 8 where possible.
    k = _pick_subrow_split(n, d)
    rows, d_r = n * k, d // k
    p2 = p2.reshape(rows, d_r)
    t2 = t2.reshape(rows, d_r)

    # --- row tiling: one full-row block for moderate row counts, 256-row
    #     (multiple of 8) blocks otherwise so blocks never blow up VMEM.
    max_single_row_block = 1024
    row_tile = rows if rows <= max_single_row_block else 256
    num_row_blocks = pl.cdiv(rows, row_tile)
    rows_pad = num_row_blocks * row_tile   # padded rows are sliced off below

    # --- feature tiling: lane-aligned blocks of ~block_budget bytes/input.
    vmem_limit, block_budget = _vmem_budget()
    itemsize = max(jnp.dtype(p2.dtype).itemsize, jnp.dtype(t2.dtype).itemsize)
    tile_max = max(128, (block_budget // (row_tile * itemsize)) // 128 * 128)

    if d_r <= tile_max:
        tile = d_r                         # single full-width block (legal)
        total_blocks = 1
    else:
        tile = tile_max
        total_blocks = pl.cdiv(d_r, tile)
        if total_blocks % 2 != 0:
            # Prefer an even block count so the feature range splits cleanly
            # across two parallel slices (v7x dual TensorCore).
            cand = tile_max - 128
            while cand >= 128:
                tb = pl.cdiv(d_r, cand)
                if tb % 2 == 0:
                    tile, total_blocks = cand, tb
                    break
                cand -= 128

    if total_blocks >= 2 and total_blocks % 2 == 0:
        num_parallel = 2                   # both TCs on v7x; harmless elsewhere
    else:
        num_parallel = 1
    j_per_slice = total_blocks // num_parallel
    ragged = (d_r % tile) != 0

    kernel = functools.partial(
        _dice_partial_kernel, d_r=d_r, tile=tile, j_per_slice=j_per_slice,
        total_blocks=total_blocks, ragged=ragged)

    grid = (num_parallel, num_row_blocks, j_per_slice)
    in_map = lambda pi, ri, ji, _J=j_per_slice: (ri, pi * _J + ji)
    out_map = lambda pi, ri, ji: (pi, ri, 0)

    bytes_in = rows * d_r * (jnp.dtype(p2.dtype).itemsize
                             + jnp.dtype(t2.dtype).itemsize)
    bytes_out = 2 * num_parallel * rows_pad * 4
    cost = pl.CostEstimate(flops=4 * rows * d_r, transcendentals=0,
                           bytes_accessed=bytes_in + bytes_out)

    num_p, den_p = pl.pallas_call(
        kernel,
        out_shape=(
            jax.ShapeDtypeStruct((num_parallel, rows_pad, 1), jnp.float32),
            jax.ShapeDtypeStruct((num_parallel, rows_pad, 1), jnp.float32),
        ),
        grid_spec=pltpu.PrefetchScalarGridSpec(
            num_scalar_prefetch=0,
            grid=grid,
            in_specs=[
                pl.BlockSpec((row_tile, tile), in_map),
                pl.BlockSpec((row_tile, tile), in_map),
            ],
            out_specs=[
                pl.BlockSpec((1, row_tile, 1), out_map),
                pl.BlockSpec((1, row_tile, 1), out_map),
            ],
            scratch_shapes=[
                pltpu.VMEM((row_tile, 1), jnp.float32),   # sum(p*t) per row
                pltpu.VMEM((row_tile, 1), jnp.float32),   # sum(p)+sum(t)
            ],
        ),
        compiler_params=pltpu.CompilerParams(
            dimension_semantics=("parallel", "parallel", "arbitrary"),
            vmem_limit_bytes=vmem_limit,
        ),
        cost_estimate=cost,
    )(p2, t2)

    # --- tiny JAX epilogue: fold parallel slices, drop padded rows, fold the
    #     k sub-rows per batch row, then dice + mean.
    num_rows = jnp.sum(num_p[:, :rows, 0], axis=0)       # (rows,)
    den_rows = jnp.sum(den_p[:, :rows, 0], axis=0)
    num_b = jnp.sum(num_rows.reshape(n, k), axis=1) + smooth
    den_b = jnp.sum(den_rows.reshape(n, k), axis=1) + smooth
    return 1.0 - jnp.mean(2.0 * num_b / den_b)


def _reference(predict, target, smooth=1.0):
    n = predict.shape[0]
    p2 = predict.reshape(n, -1).astype(jnp.float32)
    t2 = target.reshape(n, -1).astype(jnp.float32)
    num = jnp.sum(p2 * t2, axis=1) + smooth
    den = jnp.sum(p2, axis=1) + jnp.sum(t2, axis=1) + smooth
    return 1.0 - jnp.mean(2.0 * num / den)


if __name__ == "__main__":
    key = jax.random.PRNGKey(0)
    k1, k2 = jax.random.split(key)

    # NCHW like the PyTorch usage: batch=2, channels=4, spatial=16x16.
    predict = jax.nn.sigmoid(jax.random.normal(k1, (2, 4, 16, 16), jnp.float32))
    target = (jax.random.uniform(k2, (2, 4, 16, 16)) > 0.5).astype(jnp.float32)

    loss = binary_dice_loss(predict, target, smooth=1.0)
    jax.block_until_ready(loss)

    ref = _reference(predict, target, smooth=1.0)
    assert jnp.allclose(loss, ref, atol=1e-5, rtol=1e-5), (loss, ref)

    print("KERNEL_OK")
</pallas_src>

<mosaic_0001>
module attributes {stable_mosaic.version = 11 : i64} {
  func.func @_dice_partial_kernel(%arg0: i32, %arg1: i32, %arg2: i32, %arg3: memref<8x256xf32, #tpu.memory_space<vmem>>, %arg4: memref<8x256xf32, #tpu.memory_space<vmem>>, %arg5: memref<1x8x1xf32, #tpu.memory_space<vmem>>, %arg6: memref<1x8x1xf32, #tpu.memory_space<vmem>>, %arg7: memref<8x1xf32, #tpu.memory_space<vmem>>, %arg8: memref<8x1xf32, #tpu.memory_space<vmem>>) attributes {dimension_semantics = [#tpu.dimension_semantics<parallel>, #tpu.dimension_semantics<parallel>, #tpu.dimension_semantics<arbitrary>], iteration_bounds = array<i64: 1, 1, 1>, scalar_prefetch = 0 : i64, scratch_operands = 2 : i64, tpu.core_type = #tpu.core_type<tc>, window_params = [{transform_indices = @transform_0, window_bounds = array<i64: 8, 256>}, {transform_indices = @transform_1, window_bounds = array<i64: 8, 256>}, {transform_indices = @transform_2, window_bounds = array<i64: 1, 8, 1>}, {transform_indices = @transform_3, window_bounds = array<i64: 1, 8, 1>}]} {
    %c0_i32 = arith.constant 0 : i32
    %0 = arith.cmpi eq, %arg2, %c0_i32 : i32
    %1 = arith.extui %0 : i1 to i32
    %c0_i32_0 = arith.constant 0 : i32
    %2 = arith.cmpi ne, %1, %c0_i32_0 : i32
    scf.if %2 {
      %cst_15 = arith.constant 0.000000e+00 : f32
      %20 = vector.broadcast %cst_15 : f32 to vector<8x1xf32>
      %c0_16 = arith.constant 0 : index
      %c0_17 = arith.constant 0 : index
      %21 = vector.load %arg7[%c0_16, %c0_17] : memref<8x1xf32, #tpu.memory_space<vmem>>, vector<8x1xf32>
      tpu.vector_store %arg7[%c0_16, %c0_17], %20 {strides = array<i32>} : memref<8x1xf32, #tpu.memory_space<vmem>>, vector<8x1xf32>,
      %cst_18 = arith.constant 0.000000e+00 : f32
      %22 = vector.broadcast %cst_18 : f32 to vector<8x1xf32>
      %c0_19 = arith.constant 0 : index
      %c0_20 = arith.constant 0 : index
      %23 = vector.load %arg8[%c0_19, %c0_20] : memref<8x1xf32, #tpu.memory_space<vmem>>, vector<8x1xf32>
      tpu.vector_store %arg8[%c0_19, %c0_20], %22 {strides = array<i32>} : memref<8x1xf32, #tpu.memory_space<vmem>>, vector<8x1xf32>,
    } else {
    }
    %c0 = arith.constant 0 : index
    %c0_1 = arith.constant 0 : index
    %3 = vector.load %arg3[%c0, %c0_1] : memref<8x256xf32, #tpu.memory_space<vmem>>, vector<8x256xf32>
    %c0_2 = arith.constant 0 : index
    %c0_3 = arith.constant 0 : index
    %4 = vector.load %arg4[%c0_2, %c0_3] : memref<8x256xf32, #tpu.memory_space<vmem>>, vector<8x256xf32>
    %c0_4 = arith.constant 0 : index
    %c0_5 = arith.constant 0 : index
    %5 = vector.load %arg7[%c0_4, %c0_5] : memref<8x1xf32, #tpu.memory_space<vmem>>, vector<8x1xf32>
    %6 = arith.mulf %3, %4 : vector<8x256xf32>
    %cst = arith.constant dense<0.000000e+00> : vector<8xf32>
    %7 = vector.multi_reduction <add>, %6, %cst [1] : vector<8x256xf32> to vector<8xf32>
    %8 = vector.shape_cast %7 : vector<8xf32> to vector<8x1xf32>
    %9 = arith.addf %5, %8 : vector<8x1xf32>
    %c0_6 = arith.constant 0 : index
    %c0_7 = arith.constant 0 : index
    %10 = vector.load %arg7[%c0_6, %c0_7] : memref<8x1xf32, #tpu.memory_space<vmem>>, vector<8x1xf32>
    tpu.vector_store %arg7[%c0_6, %c0_7], %9 {strides = array<i32>} : memref<8x1xf32, #tpu.memory_space<vmem>>, vector<8x1xf32>,
    %c0_8 = arith.constant 0 : index
    %c0_9 = arith.constant 0 : index
    %11 = vector.load %arg8[%c0_8, %c0_9] : memref<8x1xf32, #tpu.memory_space<vmem>>, vector<8x1xf32>
    %12 = arith.addf %3, %4 : vector<8x256xf32>
    %cst_10 = arith.constant dense<0.000000e+00> : vector<8xf32>
    %13 = vector.multi_reduction <add>, %12, %cst_10 [1] : vector<8x256xf32> to vector<8xf32>
    %14 = vector.shape_cast %13 : vector<8xf32> to vector<8x1xf32>
    %15 = arith.addf %11, %14 : vector<8x1xf32>
    %c0_11 = arith.constant 0 : index
    %c0_12 = arith.constant 0 : index
    %16 = vector.load %arg8[%c0_11, %c0_12] : memref<8x1xf32, #tpu.memory_space<vmem>>, vector<8x1xf32>
    tpu.vector_store %arg8[%c0_11, %c0_12], %15 {strides = array<i32>} : memref<8x1xf32, #tpu.memory_space<vmem>>, vector<8x1xf32>,
    %c0_i32_13 = arith.constant 0 : i32
    %17 = arith.cmpi eq, %arg2, %c0_i32_13 : i32
    %18 = arith.extui %17 : i1 to i32
    %c0_i32_14 = arith.constant 0 : i32
    %19 = arith.cmpi ne, %18, %c0_i32_14 : i32
    scf.if %19 {
      %c0_15 = arith.constant 0 : index
      %c0_16 = arith.constant 0 : index
      %20 = vector.load %arg7[%c0_15, %c0_16] : memref<8x1xf32, #tpu.memory_space<vmem>>, vector<8x1xf32>
      %21 = vector.shape_cast %20 : vector<8x1xf32> to vector<1x8x1xf32>
      %c0_17 = arith.constant 0 : index
      %c0_18 = arith.constant 0 : index
      %c0_19 = arith.constant 0 : index
      %22 = vector.load %arg5[%c0_17, %c0_18, %c0_19] : memref<1x8x1xf32, #tpu.memory_space<vmem>>, vector<1x8x1xf32>
      tpu.vector_store %arg5[%c0_17, %c0_18, %c0_19], %21 {strides = array<i32>} : memref<1x8x1xf32, #tpu.memory_space<vmem>>, vector<1x8x1xf32>,
      %c0_20 = arith.constant 0 : index
      %c0_21 = arith.constant 0 : index
      %23 = vector.load %arg8[%c0_20, %c0_21] : memref<8x1xf32, #tpu.memory_space<vmem>>, vector<8x1xf32>
      %24 = vector.shape_cast %23 : vector<8x1xf32> to vector<1x8x1xf32>
      %c0_22 = arith.constant 0 : index
      %c0_23 = arith.constant 0 : index
      %c0_24 = arith.constant 0 : index
      %25 = vector.load %arg6[%c0_22, %c0_23, %c0_24] : memref<1x8x1xf32, #tpu.memory_space<vmem>>, vector<1x8x1xf32>
      tpu.vector_store %arg6[%c0_22, %c0_23, %c0_24], %24 {strides = array<i32>} : memref<1x8x1xf32, #tpu.memory_space<vmem>>, vector<1x8x1xf32>,
    } else {
    }
    return
  }
  func.func @transform_0(%arg0: i32, %arg1: i32, %arg2: i32) -> (i32, i32) {
    %c1_i32 = arith.constant 1 : i32
    %0 = arith.muli %arg0, %c1_i32 : i32
    %1 = arith.addi %0, %arg2 : i32
    %c0_i32 = arith.constant 0 : i32
    return %arg1, %1 : i32, i32
  }
  func.func @transform_1(%arg0: i32, %arg1: i32, %arg2: i32) -> (i32, i32) {
    %c1_i32 = arith.constant 1 : i32
    %0 = arith.muli %arg0, %c1_i32 : i32
    %1 = arith.addi %0, %arg2 : i32
    %c0_i32 = arith.constant 0 : i32
    return %arg1, %1 : i32, i32
  }
  func.func @transform_2(%arg0: i32, %arg1: i32, %arg2: i32) -> (i32, i32, i32) {
    %c0_i32 = arith.constant 0 : i32
    %c0_i32_0 = arith.constant 0 : i32
    return %arg0, %arg1, %c0_i32 : i32, i32, i32
  }
  func.func @transform_3(%arg0: i32, %arg1: i32, %arg2: i32) -> (i32, i32, i32) {
    %c0_i32 = arith.constant 0 : i32
    %c0_i32_0 = arith.constant 0 : i32
    return %arg0, %arg1, %c0_i32 : i32, i32, i32
  }
}

</mosaic_0001>

<bundles_post_ra>
// kernel: tpu_custom_call.1
= control target key start
LH: loop header
LB: loop body
LE: loop exit
PB: predicated region body
PF: predicated region fallthrough
CT: control target
= control target key end

     0   :  { %9 = vsyncpa [#allocation5], 0  ;;  %s182_s0 = inlined_call_operand.hbm [shape: f32[8,256], index: 0, kind: input, shape index: {}]   ;;  %s183_s1 = inlined_call_operand.hbm [shape: f32[8,256], index: 1, kind: input, shape index: {}]   ;;  %s184_s2 = inlined_call_operand.vmem [shape: f32[1,8,1], index: 2, kind: output, shape index: {0}]   ;;  %s185_s3 = inlined_call_operand.vmem [shape: f32[1,8,1], index: 3, kind: output, shape index: {1}]  }
   0x1   :  { %10 = vsyncpa [#allocation7], 0  ;;  %s141_s12 = smov [#allocation4]   ;;  %s142_s14 = smov [#allocation6]  }
   0x2   :  { %s21_s13 = sshll.u32 %s141_s12, 4  ;;  %s35_s15 = sshll.u32 %s142_s14, 4  ;;  %s22_s13 = int_to_ptr.vmem [resolvable:$true] %s21_s13  ;;  %s36_s15 = int_to_ptr.vmem [resolvable:$true] %s35_s15 }
   0x3   :  { %s105_s16 = scalar_lea.vmem %s22_s13, 256  ;;  %p110_p1 = scmp.lt.s32.totalorder %s22_s13, %s22_s13 }
   0x4   :  { %p106_p0 = scmp.ne.s32.totalorder %s22_s13, %s105_s16  ;;  %p111_p2 = scmp.lt.s32.totalorder %s105_s16, %s105_s16 }
   0x6   :  { %p112_p3 = por %p111_p2, %p110_p1 }
   0x8   :  { %p113_p4 = pnand %p112_p3, %p106_p0 }
   0xa   :  { %116 = shalt.err (!%p113_p4)
}
   0xb   :  { %24 = dma.hbm_to_vmem [thread:$0]  %s182_s0, 256, %s22_s13, [#allocation5]  }
   0xc   :  { %s125_s19 = scalar_lea.vmem %s36_s15, 256  ;;  %p130_p6 = scmp.lt.s32.totalorder %s36_s15, %s36_s15 }
   0xd   :  { %p126_p5 = scmp.ne.s32.totalorder %s36_s15, %s125_s19  ;;  %p131_p7 = scmp.lt.s32.totalorder %s125_s19, %s125_s19 }
   0xf   :  { %p132_p8 = por %p131_p7, %p130_p6 }
  0x11   :  { %p133_p9 = pnand %p132_p8, %p126_p5 }
  0x13   :  { %136 = shalt.err (!%p133_p9)
}
  0x14   :  { %38 = dma.hbm_to_vmem [thread:$0]  %s183_s1, 256, %s36_s15, [#allocation7]  }
  0x15   :  { %137 = dma.done.wait [#allocation5], 256  }
  0x16   :  { %138 = vsyncadd [#allocation5], 4294967040 }
  0x17   :  { %139 = dma.done.wait [#allocation7], 256  }
  0x18   :  { %140 = vsyncadd [#allocation7], 4294967040  ;;  %vm53_vm0 = vcmask 7168   ;;  %v143_v0 = vmov 0.0   ;;  %v56_v1 = vld [vmem:[#allocation4] sm:$0xff]  ;;  %v57_v2 = vld [vmem:[#allocation4 + $0x8] sm:$0xff] }
  0x19   :  { %54 = vst.msk [vmem:[#allocation2] sm:$0xff] %vm53_vm0, %v143_v0  ;;  %55 = vst.msk [vmem:[#allocation3] sm:$0xff] %vm53_vm0, %v143_v0  ;;  %v58_v3 = vld [vmem:[#allocation6] sm:$0xff]  ;;  %v59_v4 = vld [vmem:[#allocation6 + $0x8] sm:$0xff] }
  0x1a   :  { %v61_v5 = vmul.f32 %v58_v3, %v56_v1  ;;  %v62_v6 = vmul.f32 %v59_v4, %v57_v2  ;;  %v70_v7 = vadd.f32 %v58_v3, %v56_v1  ;;  %v71_v8 = vadd.f32 %v59_v4, %v57_v2 }
  0x1c   :  { %v63_v9 = vadd.f32 %v62_v6, %v61_v5  ;;  %v72_v10 = vadd.f32 %v71_v8, %v70_v7 }
  0x1e   :  { %64 = vadd.xlane.f32.xlu0 %v63_v9 }
  0x20   :  { %v60_v11 = vld [vmem:[#allocation2] sm:$0xff]  ;;  %v69_v14 = vld [vmem:[#allocation3] sm:$0xff] }
  0x22   :  { %73 = vadd.xlane.f32.xlu0 %v72_v10 }
  0xa7   :  { %v65_v12 = vpop.xlane.xlu0 %64 }
  0xa8   :  { %v66_v13 = vadd.f32 %v65_v12, %v60_v11 }
  0xaa   :  { %68 = vst.msk [vmem:[#allocation2] sm:$0xff] %vm53_vm0, %v66_v13 }
  0xab   :  { %v74_v15 = vpop.xlane.xlu0 %73 }
  0xac   :  { %v75_v16 = vadd.f32 %v74_v15, %v69_v14 }
  0xae   :  { %76 = vst.msk [vmem:[#allocation3] sm:$0xff] %vm53_vm0, %v75_v16 }
  0xb1   :  { %v80_v17 = vld [vmem:[#allocation2] sm:$0xff] }
  0xb2   :  { %81 = vst.msk [vmem:[%s184_s2] sm:$0xff] %vm53_vm0, %v80_v17 }
  0xb5   :  { %v82_v18 = vld [vmem:[#allocation3] sm:$0xff] }
  0xb6   :  { %83 = vst.msk [vmem:[%s185_s3] sm:$0xff] %vm53_vm0, %v82_v18 }
  0xb7   :  { %92 = vsyncpa [#allocation5], 1 }
  0xb8   :  { %93 = vsyncpa [#allocation7], 1 }

</bundles_post_ra>
